<compile_context>
chip_gen: v7x
topology: tpu7x:2x2x1
jax: 0.10.0
libtpu: 0.0.40
codegen_flags: <defaults>
</compile_context>

<pallas_src>
import functools

import jax
import jax.numpy as jnp
from jax import lax
from jax.experimental import pallas as pl
from jax.experimental.pallas import tpu as pltpu

_MIB = 1024 * 1024


def _vmem_capacity_bytes() -> int:
    """Physical VMEM per TensorCore, with conservative fallbacks."""
    try:
        info = pltpu.get_tpu_info()
        cap = getattr(info, "vmem_capacity_bytes", None)
        if cap:
            return int(cap)
    except Exception:
        pass
    try:
        kind = jax.devices()[0].device_kind.lower()
        if "v7" in kind:
            return 64 * _MIB
        if "v2" in kind or "v3" in kind:
            return 16 * _MIB
        return 128 * _MIB  # v4 / v5e / v6e
    except Exception:
        return 64 * _MIB  # conservative default


# ------------- single-pass kernel: whole (flattened) channels fit in VMEM ----

def _norm_rows_kernel(x_ref, o_ref, *, inv_n, inv_nm1):
    # x_ref / o_ref: (rows, HW) block = `rows` full channels, flattened.
    x = x_ref[...].astype(jnp.float32)
    mean = jnp.sum(x, axis=-1, keepdims=True) * inv_n
    centered = x - mean
    var = jnp.sum(centered * centered, axis=-1, keepdims=True) * inv_nm1
    inv_std = lax.rsqrt(var)  # per-row EUP rsqrt; single VPU multiply below
    o_ref[...] = (centered * inv_std).astype(o_ref.dtype)


# ------------- two-pass kernels: huge H*W, tile the reduction axis -----------

def _stats_kernel(x_ref, sum_ref, sumsq_ref, *, hw_total, hw_tile):
    h = pl.program_id(1)

    @pl.when(h == 0)
    def _():
        sum_ref[...] = jnp.zeros_like(sum_ref)
        sumsq_ref[...] = jnp.zeros_like(sumsq_ref)

    x = x_ref[...].astype(jnp.float32)
    # Mask out-of-range lanes of the (possibly partial) last HW block.
    lane = lax.broadcasted_iota(jnp.int32, x.shape, 1)
    x = jnp.where(h * hw_tile + lane < hw_total, x, 0.0)
    sum_ref[...] = sum_ref[...] + jnp.sum(x, axis=-1, keepdims=True)
    sumsq_ref[...] = sumsq_ref[...] + jnp.sum(x * x, axis=-1, keepdims=True)


def _apply_kernel(x_ref, mean_ref, inv_ref, o_ref):
    x = x_ref[...].astype(jnp.float32)
    o_ref[...] = ((x - mean_ref[...]) * inv_ref[...]).astype(o_ref.dtype)


# ------------- wrapper --------------------------------------------------------

def norm_tensor(x, *, _force_two_pass=False, _force_hw_tile=None):
    """Per-channel standardization of a (C, H, W) tensor, unbiased std."""
    C, H, W = x.shape
    HW = H * W
    x2 = x.reshape(C, HW)  # contiguous reshape: lane-dense layout, free

    itemsize = jnp.dtype(x.dtype).itemsize
    pack = 16 if itemsize == 2 else 8  # sublane packing (bf16 packs 16 rows)

    vmem_cap = _vmem_capacity_bytes()
    vmem_limit = int(min(vmem_cap * 3 // 4, 96 * _MIB))  # ~96 MiB v5e/v6e, ~48 MiB v7x
    block_budget = vmem_limit * 2 // 3                    # live-bytes allowed per step

    # Live bytes per channel row in the single-pass kernel:
    # 2x input + 2x output double buffers + two f32 temps (x, centered).
    per_row_live = HW * (4 * itemsize + 2 * 4)
    min_rows = C if C < pack else pack

    cost = pl.CostEstimate(
        flops=5 * C * HW,
        transcendentals=C,
        bytes_accessed=2 * C * HW * itemsize,
    )
    cparams = lambda sem: pltpu.CompilerParams(  # noqa: E731
        dimension_semantics=sem, vmem_limit_bytes=vmem_limit)

    if not _force_two_pass and min_rows * per_row_live <= block_budget:
        # ---------------- single-pass path ----------------
        rows_budget = block_budget // per_row_live
        rows_cap_in = (16 * _MIB) // max(HW * itemsize, 1)  # cap input block ~16 MiB
        rows = max(pack, (min(rows_budget, rows_cap_in) // pack) * pack)
        rows = min(rows, C)
        # Ensure >= 2 grid steps when possible so v7x's two TensorCores both
        # get work; harmless (~0.35 us) on single-core chips.
        if rows >= C and C >= 2 * pack:
            rows = max(pack, (pl.cdiv(C, 2) // pack) * pack)

        kernel = functools.partial(
            _norm_rows_kernel, inv_n=1.0 / HW, inv_nm1=1.0 / max(HW - 1, 1))
        out2 = pl.pallas_call(
            kernel,
            out_shape=jax.ShapeDtypeStruct((C, HW), x.dtype),
            grid_spec=pltpu.PrefetchScalarGridSpec(
                num_scalar_prefetch=0,
                grid=(pl.cdiv(C, rows),),
                in_specs=[pl.BlockSpec((rows, HW), lambda c: (c, 0))],
                out_specs=pl.BlockSpec((rows, HW), lambda c: (c, 0)),
            ),
            compiler_params=cparams(("parallel",)),
            cost_estimate=cost,
        )(x2)
        return out2.reshape(C, H, W)

    # ---------------- two-pass path (huge H*W) ----------------
    rows = min_rows
    hw_budget = block_budget // (rows * (4 * itemsize + 2 * 4))
    hw_cap_in = (8 * _MIB) // max(rows * itemsize, 1)
    hw_tile = max(128, (min(hw_budget, hw_cap_in) // 128) * 128)
    hw_tile = min(hw_tile, pl.cdiv(HW, 128) * 128)
    if _force_hw_tile is not None:
        hw_tile = _force_hw_tile
    grid = (pl.cdiv(C, rows), pl.cdiv(HW, hw_tile))

    stats_kernel = functools.partial(_stats_kernel, hw_total=HW, hw_tile=hw_tile)
    sums, sumsqs = pl.pallas_call(
        stats_kernel,
        out_shape=(jax.ShapeDtypeStruct((C, 1), jnp.float32),
                   jax.ShapeDtypeStruct((C, 1), jnp.float32)),
        grid_spec=pltpu.PrefetchScalarGridSpec(
            num_scalar_prefetch=0,
            grid=grid,
            in_specs=[pl.BlockSpec((rows, hw_tile), lambda c, h: (c, h))],
            out_specs=[pl.BlockSpec((rows, 1), lambda c, h: (c, 0)),
                       pl.BlockSpec((rows, 1), lambda c, h: (c, 0))],
        ),
        compiler_params=cparams(("parallel", "arbitrary")),
        cost_estimate=pl.CostEstimate(
            flops=3 * C * HW, transcendentals=0,
            bytes_accessed=C * HW * itemsize),
    )(x2)

    # Finalize per-channel stats (C values: negligible, plain JAX).
    mean = sums / HW
    var = (sumsqs - HW * mean * mean) / max(HW - 1, 1)
    var = jnp.maximum(var, 0.0)       # guard fp round-off; std==0 still -> inf
    inv_std = lax.rsqrt(var)

    out2 = pl.pallas_call(
        _apply_kernel,
        out_shape=jax.ShapeDtypeStruct((C, HW), x.dtype),
        grid_spec=pltpu.PrefetchScalarGridSpec(
            num_scalar_prefetch=0,
            grid=grid,
            in_specs=[pl.BlockSpec((rows, hw_tile), lambda c, h: (c, h)),
                      pl.BlockSpec((rows, 1), lambda c, h: (c, 0)),
                      pl.BlockSpec((rows, 1), lambda c, h: (c, 0))],
            out_specs=pl.BlockSpec((rows, hw_tile), lambda c, h: (c, h)),
        ),
        compiler_params=cparams(("parallel", "parallel")),
        cost_estimate=cost,
    )(x2, mean, inv_std)
    return out2.reshape(C, H, W)


def _reference(x):
    H, W = x.shape[1], x.shape[2]
    mean = x.mean(axis=(1, 2), keepdims=True)
    std = jnp.sqrt(((x - mean) ** 2).sum(axis=(1, 2), keepdims=True)
                   / (H * W - 1))
    return (x - mean) / std


if __name__ == "__main__":
    key = jax.random.PRNGKey(0)
    k0, k1, k2 = jax.random.split(key, 3)

    # 1) Primary small (C, H, W) input (single-pass path).
    x = jax.random.normal(k0, (4, 16, 16), dtype=jnp.float32) * 3.0 + 1.5
    out = jax.block_until_ready(norm_tensor(x))
    assert jnp.allclose(out, _reference(x), atol=1e-5, rtol=1e-5), "single-pass mismatch"

    # 2) Partial channel block + multi-step grid (C not a multiple of the pack).
    xb = jax.random.normal(k1, (20, 16, 16), dtype=jnp.float32) * 2.0 - 0.5
    outb = jax.block_until_ready(norm_tensor(xb))
    assert jnp.allclose(outb, _reference(xb), atol=1e-5, rtol=1e-5), "partial-block mismatch"

    # 3) Exercise the two-pass (HW-tiled) path at a small shape, incl. a
    #    partial lane tile (HW = 400, tile = 128).
    xc = jax.random.normal(k2, (4, 16, 25), dtype=jnp.float32) * 3.0 + 1.5
    outc = jax.block_until_ready(
        norm_tensor(xc, _force_two_pass=True, _force_hw_tile=128))
    assert jnp.allclose(outc, _reference(xc), atol=1e-4, rtol=1e-4), "two-pass mismatch"

    print("KERNEL_OK")
</pallas_src>

<mosaic_0001>
module attributes {stable_mosaic.version = 11 : i64} {
  func.func @_norm_rows_kernel(%arg0: i32, %arg1: memref<4x256xf32, #tpu.memory_space<vmem>>, %arg2: memref<4x256xf32, #tpu.memory_space<vmem>>) attributes {dimension_semantics = [#tpu.dimension_semantics<parallel>], iteration_bounds = array<i64: 1>, scalar_prefetch = 0 : i64, scratch_operands = 0 : i64, tpu.core_type = #tpu.core_type<tc>, window_params = [{transform_indices = @transform_0, window_bounds = array<i64: 4, 256>}, {transform_indices = @transform_1, window_bounds = array<i64: 4, 256>}]} {
    %c0 = arith.constant 0 : index
    %c0_0 = arith.constant 0 : index
    %0 = vector.load %arg1[%c0, %c0_0] : memref<4x256xf32, #tpu.memory_space<vmem>>, vector<4x256xf32>
    %cst = arith.constant dense<0.000000e+00> : vector<4xf32>
    %1 = vector.multi_reduction <add>, %0, %cst [1] : vector<4x256xf32> to vector<4xf32>
    %2 = vector.shape_cast %1 : vector<4xf32> to vector<4x1xf32>
    %cst_1 = arith.constant 3.906250e-03 : f32
    %3 = vector.broadcast %cst_1 : f32 to vector<4x1xf32>
    %4 = arith.mulf %2, %3 : vector<4x1xf32>
    %5 = vector.broadcast %4 : vector<4x1xf32> to vector<4x256xf32>
    %6 = arith.subf %0, %5 : vector<4x256xf32>
    %7 = arith.mulf %6, %6 : vector<4x256xf32>
    %cst_2 = arith.constant dense<0.000000e+00> : vector<4xf32>
    %8 = vector.multi_reduction <add>, %7, %cst_2 [1] : vector<4x256xf32> to vector<4xf32>
    %9 = vector.shape_cast %8 : vector<4xf32> to vector<4x1xf32>
    %cst_3 = arith.constant 0.00392156886 : f32
    %10 = vector.broadcast %cst_3 : f32 to vector<4x1xf32>
    %11 = arith.mulf %9, %10 : vector<4x1xf32>
    %12 = math.rsqrt %11 : vector<4x1xf32>
    %13 = vector.broadcast %12 : vector<4x1xf32> to vector<4x256xf32>
    %14 = arith.mulf %6, %13 : vector<4x256xf32>
    %c0_4 = arith.constant 0 : index
    %c0_5 = arith.constant 0 : index
    %15 = vector.load %arg2[%c0_4, %c0_5] : memref<4x256xf32, #tpu.memory_space<vmem>>, vector<4x256xf32>
    tpu.vector_store %arg2[%c0_4, %c0_5], %14 {strides = array<i32>} : memref<4x256xf32, #tpu.memory_space<vmem>>, vector<4x256xf32>,
    return
  }
  func.func @transform_0(%arg0: i32) -> (i32, i32) {
    %c0_i32 = arith.constant 0 : i32
    %c0_i32_0 = arith.constant 0 : i32
    return %arg0, %c0_i32 : i32, i32
  }
  func.func @transform_1(%arg0: i32) -> (i32, i32) {
    %c0_i32 = arith.constant 0 : i32
    %c0_i32_0 = arith.constant 0 : i32
    return %arg0, %c0_i32 : i32, i32
  }
}

</mosaic_0001>

<bundles_post_ra>
// kernel: tpu_custom_call.1
= control target key start
LH: loop header
LB: loop body
LE: loop exit
PB: predicated region body
PF: predicated region fallthrough
CT: control target
= control target key end

     0   :  { %6 = vsyncpa [#allocation3], 0  ;;  %s174_s0 = inlined_call_operand.hbm [shape: f32[4,256], index: 0, kind: input, shape index: {}]   ;;  %s175_s1 = inlined_call_operand.hbm [shape: f32[4,256], index: 1, kind: output, shape index: {}]  }
   0x1   :  { %7 = vsyncpa [#allocation4], 0  ;;  %s133_s6 = smov [#allocation2]   ;;  %s85_s10 = scalar_lea.hbm %s174_s0, 128 }
   0x2   :  { %s14_s7 = sshll.u32 %s133_s6, 4  ;;  %p86_p0 = scmp.ne.s32.totalorder %s174_s0, %s85_s10  ;;  %s15_s7 = int_to_ptr.vmem [resolvable:$true] %s14_s7 }
   0x3   :  { %p89_p1 = scmp.lt.u32.totalorder %s85_s10, %s174_s0 }
   0x5   :  { %p91_p2 = pnand %p89_p1, %p86_p0 }
   0x7   :  { %94 = shalt.err (!%p91_p2)
}
   0x8   :  { %s95_s15 = scalar_lea.vmem %s15_s7, 128  ;;  %p100_p4 = scmp.lt.s32.totalorder %s15_s7, %s15_s7 }
   0x9   :  { %p96_p3 = scmp.ne.s32.totalorder %s15_s7, %s95_s15  ;;  %p101_p5 = scmp.lt.s32.totalorder %s95_s15, %s95_s15 }
   0xb   :  { %p102_p6 = por %p101_p5, %p100_p4 }
   0xd   :  { %p103_p7 = pnand %p102_p6, %p96_p3 }
   0xf   :  { %106 = shalt.err (!%p103_p7)
}
  0x10   :  { %17 = dma.hbm_to_vmem [thread:$0]  %s174_s0, 128, %s15_s7, [#allocation3]  }
  0x11   :  { %129 = dma.done.wait [#allocation3], 128  }
  0x12   :  { %130 = vsyncadd [#allocation3], 4294967168  ;;  %vm25_vm0 = vcmask 1043456   ;;  %v21_v0 = vld [vmem:[#allocation2] sm:$0xff]  ;;  %v134_v5 = vmov 839922192   ;;  %v36_v7 = vlaneseq }
  0x13   :  { %v23_v1 = vcombine.high %v21_v0, %v21_v0  ;;  %v26_v2 = vsel %vm25_vm0, %v21_v0, 0.0  ;;  %v34_v6 = vunpack.c.l.s4 %v134_v5  ;;  %s135_s0 = smov [#allocation5]  }
  0x14   :  { %v37_v9 = vshrl.u32 %v36_v7, 7  ;;  %s70_s18 = sshll.u32 %s135_s0, 4  ;;  %s71_s18 = int_to_ptr.vmem [resolvable:$true] %s70_s18 }
  0x15   :  { %v27_v3 = vsel %vm25_vm0, %v23_v1, 0.0  ;;  %v35_v8 = vunpack.c.0.s8 %v34_v6  ;;  %s107_s19 = scalar_lea.vmem %s71_s18, 128  ;;  %p112_p9 = scmp.lt.s32.totalorder %s71_s18, %s71_s18 }
  0x16   :  { %v28_v4 = vadd.f32 %v27_v3, %v26_v2  ;;  %p108_p8 = scmp.ne.s32.totalorder %s71_s18, %s107_s19  ;;  %p113_p10 = scmp.lt.s32.totalorder %s107_s19, %s107_s19 }
  0x17   :  { %v38_v10 = vsub.s32 %v35_v8, %v37_v9 }
  0x18   :  { %29 = vadd.xlane.f32.xlu0 %v28_v4  ;;  %p114_p11 = por %p113_p10, %p112_p9 }
  0x1a   :  { %p115_p12 = pnand %p114_p11, %p108_p8 }
  0xa5   :  { %v30_v11 = vpop.xlane.xlu0 %29 }
  0xa6   :  { %v31_v12 = vmul.f32 0.00390625, %v30_v11 }
  0xa8   :  { %v39_v13 = vrot.slane %v31_v12, %v38_v10 }
  0xaa   :  { %v41_v14 = vsub.f32 %v21_v0, %v39_v13 }
  0xac   :  { %v42_v15 = vmul.f32 %v41_v14, %v41_v14 }
  0xae   :  { %v44_v16 = vcombine.high %v42_v15, %v42_v15  ;;  %v46_v17 = vsel %vm25_vm0, %v42_v15, 0.0 }
  0xb0   :  { %v47_v18 = vsel %vm25_vm0, %v44_v16, 0.0 }
  0xb1   :  { %v48_v19 = vadd.f32 %v47_v18, %v46_v17 }
  0xb3   :  { %49 = vadd.xlane.f32.xlu0 %v48_v19 }
 0x140   :  { %v50_v20 = vpop.xlane.xlu0 %49 }
 0x141   :  { %v51_v21 = vmul.f32 0.003921569, %v50_v20 }
 0x143   :  { %83 = vrsqrt.f32 %v51_v21 }
 0x14d   :  { %v84_v22 = vpop.eup %83 }
 0x14e   :  { %v60_v23 = vrot.slane %v84_v22, %v38_v10 }
 0x150   :  { %v62_v24 = vmul.f32 %v60_v23, %v41_v14 }
 0x152   :  { %63 = vst [vmem:[#allocation5] sm:$0xff] %v62_v24 }
 0x153   :  { %118 = shalt.err (!%p115_p12)
}
 0x154   :  { %s119_s22 = scalar_lea.hbm %s175_s1, 128 }
 0x155   :  { %p120_p13 = scmp.ne.s32.totalorder %s175_s1, %s119_s22  ;;  %p123_p0 = scmp.lt.u32.totalorder %s119_s22, %s175_s1 }
 0x157   :  { %p125_p1 = pnand %p123_p0, %p120_p13 }
 0x159   :  { %128 = shalt.err (!%p125_p1)
}
 0x15a   :  { %73 = dma.vmem_to_hbm [thread:$0]  %s71_s18, 128, %s175_s1, [#allocation4]  }
 0x15b   :  { %131 = dma.done.wait [#allocation4], 128  }
 0x15c   :  { %132 = vsyncadd [#allocation4], 4294967168 }
 0x15d   :  { %77 = vsyncpa [#allocation3], 1 }
 0x15e   :  { %78 = vsyncpa [#allocation4], 1 }

</bundles_post_ra>
